<compile_context>
chip_gen: v5e
topology: v5e:2x2
jax: 0.10.0
libtpu: 0.0.40
codegen_flags: <defaults>
</compile_context>

<pallas_src>
import jax
import jax.numpy as jnp
from jax.experimental import pallas as pl
from jax.experimental.pallas import tpu as pltpu
import numpy as np


# ----------------------------- kernels ------------------------------------ #

def xw_kernel(x_ref, w_ref, x0_ref, xw12_ref):
    # One wide, lane-dense feature matmul: [TILE, Fp] @ [Fp, 3*P] -> [TILE, 3*P].
    xw = jnp.dot(x_ref[...], w_ref[...], preferred_element_type=jnp.float32)
    p = x0_ref.shape[-1]
    x0_ref[...] = xw[:, :p]                                 # Linear branch, f32
    xw12_ref[...] = xw[:, p:].astype(xw12_ref.dtype)        # conv branches, bf16


def make_agg_kernel(tile):
    def agg_kernel(a1_ref, a2_ref, xw_ref, o1_ref, o2_ref):
        # grid = (row tile i [parallel], reduction tile k [arbitrary, innermost]).
        # Output blocks are indexed (i, 0) for every k -> resident accumulators.
        k = pl.program_id(1)

        @pl.when(k == 0)
        def _():
            o1_ref[...] = jnp.zeros_like(o1_ref)
            o2_ref[...] = jnp.zeros_like(o2_ref)

        p = o1_ref.shape[-1]
        if xw_ref.shape[0] == tile:
            # Streamed path: a fresh (TILE, 2P) block is DMA'd per reduction step.
            xw = xw_ref[...]
        else:
            # Resident path: whole (N_pad, 2P) slab lives in VMEM; slice current K rows.
            start = pl.multiple_of(k * tile, tile)
            xw = xw_ref[pl.ds(start, tile), :]

        # Static 128-aligned column slices select the two branches (no XLA slicing).
        o1_ref[...] += jnp.dot(a1_ref[...], xw[:, :p],
                               preferred_element_type=jnp.float32)
        o2_ref[...] += jnp.dot(a2_ref[...], xw[:, p:],
                               preferred_element_type=jnp.float32)

    return agg_kernel


# ----------------------------- wrapper ------------------------------------ #

def _round_up(v, m):
    return (v + m - 1) // m * m


def dense_adj(edge_index, edge_attr, padded_nodes):
    """Scatter the weighted edge list into a dense [Np, Np] adjacency, A[dst, src] = w."""
    src, dst = edge_index[0], edge_index[1]
    a = jnp.zeros((padded_nodes, padded_nodes), jnp.float32)
    return a.at[dst, src].add(edge_attr.astype(jnp.float32))


def inception_block(x, w_ln, w1, w2, edge_index, edge_attr, edge_index2, edge_attr2,
                    *, tile=None):
    """w_ln, w1, w2 are all [in_dim, out_dim] (Linear weight pre-transposed)."""
    n, f = x.shape
    out_dim = w_ln.shape[1]

    # Lane-dense per-branch feature width and lane-dense contraction dim.
    p = _round_up(out_dim, 128)
    f_pad = _round_up(f, 128)

    # Tile heuristic: 512 minimum for mid-size graphs, 1024 for large ones.  Capped at 1024
    # and vmem_limit_bytes=48 MiB so the same config fits v7x's 64 MiB physical VMEM while
    # remaining valid on v5e/v6e (which simply have extra headroom).
    if tile is None:
        if n <= 384:
            tile = 256
        elif n <= 4096:
            tile = 512
        else:
            tile = 1024
    n_pad = _round_up(n, tile)
    n_tiles = n_pad // tile
    vmem_limit = 48 * 1024 * 1024

    # Fused, zero-padded weight slab: [Fp, 3*P] = [W_ln | W1 | W2].
    w_cat = jnp.zeros((f_pad, 3 * p), jnp.float32)
    w_cat = w_cat.at[:f, 0:out_dim].set(w_ln.astype(jnp.float32))
    w_cat = w_cat.at[:f, p:p + out_dim].set(w1.astype(jnp.float32))
    w_cat = w_cat.at[:f, 2 * p:2 * p + out_dim].set(w2.astype(jnp.float32))

    # Zero-padded node features (padding rows/cols are zero so un-padding is exact).
    x_pad = jnp.zeros((n_pad, f_pad), jnp.float32).at[:n, :f].set(x.astype(jnp.float32))

    # ---- Phase 1: [x0 | xw1 | xw2] = x @ [W_ln | W1 | W2], tiled over rows. ----
    x0_slab, xw12 = pl.pallas_call(
        xw_kernel,
        out_shape=(jax.ShapeDtypeStruct((n_pad, p), jnp.float32),
                   jax.ShapeDtypeStruct((n_pad, 2 * p), jnp.bfloat16)),
        grid_spec=pltpu.PrefetchScalarGridSpec(
            num_scalar_prefetch=0,
            grid=(n_tiles,),
            in_specs=[pl.BlockSpec((tile, f_pad), lambda i: (i, 0)),
                      pl.BlockSpec((f_pad, 3 * p), lambda i: (0, 0))],
            out_specs=(pl.BlockSpec((tile, p), lambda i: (i, 0)),
                       pl.BlockSpec((tile, 2 * p), lambda i: (i, 0)))),
        compiler_params=pltpu.CompilerParams(
            dimension_semantics=("parallel",),
            vmem_limit_bytes=vmem_limit),
        cost_estimate=pl.CostEstimate(
            flops=2 * n_pad * f_pad * 3 * p,
            transcendentals=0,
            bytes_accessed=4 * (n_pad * f_pad + f_pad * 3 * p + n_pad * p)
                           + 2 * n_pad * 2 * p),
    )(x_pad, w_cat)

    # Dense adjacencies in bf16 (built with an f32 scatter-add, then cast; accumulation in
    # phase 2 stays f32 on the MXU).
    a1 = dense_adj(edge_index, edge_attr, n_pad).astype(jnp.bfloat16)
    a2 = dense_adj(edge_index2, edge_attr2, n_pad).astype(jnp.bfloat16)

    # Keep the xw12 slab VMEM-resident across the whole phase-2 grid when it is small
    # enough (double-buffered bf16 slab <= 8 MiB); otherwise stream (TILE, 2P) blocks.
    xw_bytes_resident = n_pad * 2 * p * 2          # bf16
    xw_resident = 2 * xw_bytes_resident <= 8 * 1024 * 1024
    if xw_resident:
        xw_spec = pl.BlockSpec((n_pad, 2 * p), lambda i, k: (0, 0))
        xw_bytes = xw_bytes_resident
    else:
        xw_spec = pl.BlockSpec((tile, 2 * p), lambda i, k: (k, 0))
        xw_bytes = n_tiles * xw_bytes_resident     # re-read once per row tile

    # ---- Phase 2: tiled A1 @ xw1 and A2 @ xw2, accumulating into the output refs. ----
    out_sds = jax.ShapeDtypeStruct((n_pad, p), jnp.float32)
    out1, out2 = pl.pallas_call(
        make_agg_kernel(tile),
        out_shape=(out_sds, out_sds),
        grid_spec=pltpu.PrefetchScalarGridSpec(
            num_scalar_prefetch=0,
            grid=(n_tiles, n_tiles),
            in_specs=[pl.BlockSpec((tile, tile), lambda i, k: (i, k)),
                      pl.BlockSpec((tile, tile), lambda i, k: (i, k)),
                      xw_spec],
            out_specs=(pl.BlockSpec((tile, p), lambda i, k: (i, 0)),
                       pl.BlockSpec((tile, p), lambda i, k: (i, 0)))),
        compiler_params=pltpu.CompilerParams(
            dimension_semantics=("parallel", "arbitrary"),
            vmem_limit_bytes=vmem_limit),
        cost_estimate=pl.CostEstimate(
            flops=2 * 2 * n_pad * n_pad * p,
            transcendentals=0,
            bytes_accessed=2 * n_pad * n_pad * 2 + xw_bytes + 4 * 2 * n_pad * p),
    )(a1, a2, xw12)

    # Un-pad to the module's output shapes.
    x0 = x0_slab[:n, :out_dim]
    x1 = out1[:n, :out_dim]
    x2 = out2[:n, :out_dim]
    return x0, x1, x2


# ------------------------------- demo -------------------------------------- #

if __name__ == "__main__":
    key = jax.random.PRNGKey(0)
    N, E, IN_DIM, OUT_DIM = 16, 32, 8, 8

    (k_x, k_ln, k_w1, k_w2,
     k_src1, k_dst1, k_attr1,
     k_src2, k_dst2, k_attr2) = jax.random.split(key, 10)

    # Node features.
    x = jax.random.normal(k_x, (N, IN_DIM), dtype=jnp.float32)

    # Parameters (bias=False):
    #  - nn.Linear weight is [out, in]; pre-transpose to [in, out] for the kernel.
    #  - DIGCNConv weight is [in, out].
    w_ln = (jax.random.normal(k_ln, (OUT_DIM, IN_DIM), jnp.float32) / np.sqrt(IN_DIM)).T
    w1 = jax.random.normal(k_w1, (IN_DIM, OUT_DIM), jnp.float32) / np.sqrt(IN_DIM)
    w2 = jax.random.normal(k_w2, (IN_DIM, OUT_DIM), jnp.float32) / np.sqrt(IN_DIM)

    # First- and second-order weighted edge lists (edge_index: [2, E], edge_attr: [E]).
    edge_index = jnp.stack([jax.random.randint(k_src1, (E,), 0, N),
                            jax.random.randint(k_dst1, (E,), 0, N)])
    edge_attr = jax.random.uniform(k_attr1, (E,), jnp.float32)
    edge_index2 = jnp.stack([jax.random.randint(k_src2, (E,), 0, N),
                             jax.random.randint(k_dst2, (E,), 0, N)])
    edge_attr2 = jax.random.uniform(k_attr2, (E,), jnp.float32)

    x0, x1, x2 = jax.block_until_ready(
        inception_block(x, w_ln, w1, w2, edge_index, edge_attr, edge_index2, edge_attr2))

    # Plain-JAX reference (same math, unpadded, outside Pallas).
    def ref_adj(ei, ea):
        a = jnp.zeros((N, N), jnp.float32)
        return a.at[ei[1], ei[0]].add(ea.astype(jnp.float32))

    r0 = x @ w_ln
    r1 = ref_adj(edge_index, edge_attr) @ (x @ w1)
    r2 = ref_adj(edge_index2, edge_attr2) @ (x @ w2)
    # Linear branch stays full f32 precision; conv branches use bf16 A/xw inputs with
    # f32 accumulation, so their tolerance is loosened accordingly.
    np.testing.assert_allclose(np.asarray(x0), np.asarray(r0), rtol=1e-5, atol=1e-5)
    np.testing.assert_allclose(np.asarray(x1), np.asarray(r1), rtol=2e-2, atol=2e-2)
    np.testing.assert_allclose(np.asarray(x2), np.asarray(r2), rtol=2e-2, atol=2e-2)

    print("KERNEL_OK")
</pallas_src>

<mosaic_0001>
module attributes {stable_mosaic.version = 11 : i64} {
  func.func @xw_kernel(%arg0: i32, %arg1: memref<256x128xf32, #tpu.memory_space<vmem>>, %arg2: memref<128x384xf32, #tpu.memory_space<vmem>>, %arg3: memref<256x128xf32, #tpu.memory_space<vmem>>, %arg4: memref<256x256xbf16, #tpu.memory_space<vmem>>) attributes {dimension_semantics = [#tpu.dimension_semantics<parallel>], iteration_bounds = array<i64: 1>, scalar_prefetch = 0 : i64, scratch_operands = 0 : i64, tpu.core_type = #tpu.core_type<tc>, window_params = [{transform_indices = @transform_0, window_bounds = array<i64: 256, 128>}, {pipeline_mode = #tpu.pipeline_mode<synchronous>, transform_indices = @transform_1, window_bounds = array<i64: 128, 384>}, {transform_indices = @transform_2, window_bounds = array<i64: 256, 128>}, {transform_indices = @transform_3, window_bounds = array<i64: 256, 256>}]} {
    %c0 = arith.constant 0 : index
    %c0_0 = arith.constant 0 : index
    %0 = vector.load %arg1[%c0, %c0_0] : memref<256x128xf32, #tpu.memory_space<vmem>>, vector<256x128xf32>
    %c0_1 = arith.constant 0 : index
    %c0_2 = arith.constant 0 : index
    %1 = vector.load %arg2[%c0_1, %c0_2] : memref<128x384xf32, #tpu.memory_space<vmem>>, vector<128x384xf32>
    %cst = arith.constant dense<0.000000e+00> : vector<256x384xf32>
    %2 = tpu.matmul %0, %1, %cst {dimension_numbers = #tpu.dot_dimension_numbers<[1], [0], [0], [1], [0, 0, 1, 1], [], []>} : vector<256x128xf32>, vector<128x384xf32>, vector<256x384xf32> -> vector<256x384xf32>
    %3 = vector.extract_strided_slice %2 {offsets = [0, 0], sizes = [256, 128], strides = [1, 1]} : vector<256x384xf32> to vector<256x128xf32>
    %c0_3 = arith.constant 0 : index
    %c0_4 = arith.constant 0 : index
    %4 = vector.load %arg3[%c0_3, %c0_4] : memref<256x128xf32, #tpu.memory_space<vmem>>, vector<256x128xf32>
    tpu.vector_store %arg3[%c0_3, %c0_4], %3 {strides = array<i32>} : memref<256x128xf32, #tpu.memory_space<vmem>>, vector<256x128xf32>,
    %5 = vector.extract_strided_slice %2 {offsets = [0, 128], sizes = [256, 256], strides = [1, 1]} : vector<256x384xf32> to vector<256x256xf32>
    %6 = arith.truncf %5 : vector<256x256xf32> to vector<256x256xbf16>
    %c0_5 = arith.constant 0 : index
    %c0_6 = arith.constant 0 : index
    %7 = vector.load %arg4[%c0_5, %c0_6] : memref<256x256xbf16, #tpu.memory_space<vmem>>, vector<256x256xbf16>
    tpu.vector_store %arg4[%c0_5, %c0_6], %6 {strides = array<i32>} : memref<256x256xbf16, #tpu.memory_space<vmem>>, vector<256x256xbf16>,
    return
  }
  func.func @transform_0(%arg0: i32) -> (i32, i32) {
    %c0_i32 = arith.constant 0 : i32
    %c0_i32_0 = arith.constant 0 : i32
    return %arg0, %c0_i32 : i32, i32
  }
  func.func @transform_1(%arg0: i32) -> (i32, i32) {
    %c0_i32 = arith.constant 0 : i32
    %c0_i32_0 = arith.constant 0 : i32
    %c0_i32_1 = arith.constant 0 : i32
    return %c0_i32, %c0_i32_0 : i32, i32
  }
  func.func @transform_2(%arg0: i32) -> (i32, i32) {
    %c0_i32 = arith.constant 0 : i32
    %c0_i32_0 = arith.constant 0 : i32
    return %arg0, %c0_i32 : i32, i32
  }
  func.func @transform_3(%arg0: i32) -> (i32, i32) {
    %c0_i32 = arith.constant 0 : i32
    %c0_i32_0 = arith.constant 0 : i32
    return %arg0, %c0_i32 : i32, i32
  }
}

</mosaic_0001>

<bundles_post_ra>
// kernel: tpu_custom_call.1
= control target key start
LH: loop header
LB: loop body
LE: loop exit
PB: predicated region body
PF: predicated region fallthrough
CT: control target
= control target key end

     0   :  { %9 = vsyncpa [#allocation3], 0  ;;  %s978_s0 = inlined_call_operand.hbm [shape: f32[256,128], index: 0, kind: input, shape index: {}]   ;;  %s979_s1 = inlined_call_operand.hbm [shape: f32[128,384], index: 1, kind: input, shape index: {}]   ;;  %s980_s2 = inlined_call_operand.hbm [shape: f32[256,128], index: 2, kind: output, shape index: {0}]   ;;  %s981_s3 = inlined_call_operand.hbm [shape: bf16[256,256], index: 3, kind: output, shape index: {1}]  }
   0x1   :  { %10 = vsyncpa [#allocation6], 0 }
   0x2   :  { %11 = vsyncpa [#allocation4], 0 }
   0x3   :  { %12 = vsyncpa [#allocation9], 0  ;;  %s17_s14 = sshll.u32 %s978_s0, 4  ;;  %s760_s15 = smov [#allocation2]   ;;  %s18_s14 = int_to_ptr.hbm [resolvable:$true] %s17_s14 }
   0x4   :  { %s19_s16 = sshll.u32 %s760_s15, 4  ;;  %s30_s19 = sshll.u32 %s979_s1, 4  ;;  %s20_s16 = int_to_ptr.vmem [resolvable:$true] %s19_s16  ;;  %s31_s19 = int_to_ptr.hbm [resolvable:$true] %s30_s19 }
   0x5   :  { %s761_s20 = smov 128   ;;  %s762_s21 = smov 8  }
   0x6   :  { %25 = dma.hbm_to_vmem [thread:$0]  %s18_s14, 4096, %s20_s16, [#allocation3], %s761_s20, %s761_s20, %s762_s21  }
   0x7   :  { %s763_s22 = smov [#allocation5]   ;;  %s764_s24 = smov 384  }
   0x8   :  { %s32_s23 = sshll.u32 %s763_s22, 4  ;;  %s765_s0 = smov 24   ;;  %s33_s23 = int_to_ptr.vmem [resolvable:$true] %s32_s23 }
   0x9   :  { %38 = dma.hbm_to_vmem [thread:$0]  %s31_s19, 6144, %s33_s23, [#allocation6], %s764_s24, %s764_s24, %s765_s0  }
   0xa   :  { %752 = dma.done.wait [#allocation3], 4096  }
   0xb   :  { %753 = vsyncadd [#allocation3], 4294963200 }
   0xc   :  { %754 = dma.done.wait [#allocation6], 6144  }
   0xd   :  { %755 = vsyncadd [#allocation6], 4294961152  ;;  %v124_v0 = vld [vmem:[#allocation5 + $0x168] sm:$0xff]  ;;  %v797_v1 = vld [vmem:[#allocation5 + $0x178] sm:$0xff]  ;;  %s766_s1 = smov [#allocation7]   ;;  %s568_s28 = sshll.u32 %s980_s2, 4  ;;  %s569_s28 = int_to_ptr.hbm [resolvable:$true] %s568_s28 }
   0xe   :  { %v121_v2 = vld [vmem:[#allocation5 + $0x150] sm:$0xff]  ;;  %600 = vmatpush.msra.mxu3 %v124_v0  ;;  %353 = vmatpush.msra.mxu2 %v797_v1  ;;  %v800_v3 = vld [vmem:[#allocation5 + $0x160] sm:$0xff]  ;;  %v118_v4 = vld [vmem:[#allocation5 + $0x138] sm:$0xff]  ;;  %s566_s25 = sshll.u32 %s766_s1, 4  ;;  %s767_s29 = smov [#allocation8]   ;;  %s567_s25 = int_to_ptr.vmem [resolvable:$true] %s566_s25 }
   0xf   :  { %v802_v5 = vld [vmem:[#allocation5 + $0x148] sm:$0xff]  ;;  %v804_v6 = vld [vmem:[#allocation5 + $0x170] sm:$0xff]  ;;  %127 = vmatpush.msra.mxu0 %v124_v0  ;;  %v807_v7 = vld [vmem:[#allocation5 + $0x158] sm:$0xff]  ;;  %s579_s30 = sshll.u32 %s767_s29, 4  ;;  %s581_s6 = sshll.u32 %s981_s3, 4  ;;  %s580_s30 = int_to_ptr.vmem [resolvable:$true] %s579_s30  ;;  %s582_s6 = int_to_ptr.hbm [resolvable:$true] %s581_s6 }
  0x10   :  { %601 = vmatpush.msra.mxu3 %v121_v2  ;;  %354 = vmatpush.msra.mxu2 %v800_v3  ;;  %v115_v8 = vld [vmem:[#allocation5 + $0x120] sm:$0xff]  ;;  %v810_v9 = vld [vmem:[#allocation5 + $0x130] sm:$0xff]  ;;  %v112_v11 = vld [vmem:[#allocation5 + $0x108] sm:$0xff] }
  0x11   :  { %240 = vmatpush.msra.mxu1 %v804_v6  ;;  %128 = vmatpush.msra.mxu0 %v121_v2  ;;  %v813_v10 = vld [vmem:[#allocation5 + $0x140] sm:$0xff]  ;;  %v816_v12 = vld [vmem:[#allocation5 + $0x118] sm:$0xff]  ;;  %v819_v13 = vld [vmem:[#allocation5 + $0x128] sm:$0xff] }
  0x12   :  { %602 = vmatpush.msra.mxu3 %v118_v4  ;;  %355 = vmatpush.msra.mxu2 %v802_v5  ;;  %v109_v14 = vld [vmem:[#allocation5 + $0xf0] sm:$0xff]  ;;  %v822_v15 = vld [vmem:[#allocation5 + $0x100] sm:$0xff]  ;;  %v106_v17 = vld [vmem:[#allocation5 + $0xd8] sm:$0xff] }
  0x13   :  { %241 = vmatpush.msra.mxu1 %v807_v7  ;;  %129 = vmatpush.msra.mxu0 %v118_v4  ;;  %v825_v16 = vld [vmem:[#allocation5 + $0x110] sm:$0xff]  ;;  %v828_v18 = vld [vmem:[#allocation5 + $0xe8] sm:$0xff]  ;;  %v831_v19 = vld [vmem:[#allocation5 + $0xf8] sm:$0xff] }
  0x14   :  { %603 = vmatpush.msra.mxu3 %v115_v8  ;;  %356 = vmatpush.msra.mxu2 %v810_v9  ;;  %v103_v20 = vld [vmem:[#allocation5 + $0xc0] sm:$0xff]  ;;  %v834_v21 = vld [vmem:[#allocation5 + $0xd0] sm:$0xff]  ;;  %v100_v23 = vld [vmem:[#allocation5 + $0xa8] sm:$0xff] }
  0x15   :  { %242 = vmatpush.msra.mxu1 %v813_v10  ;;  %130 = vmatpush.msra.mxu0 %v115_v8  ;;  %v837_v22 = vld [vmem:[#allocation5 + $0xe0] sm:$0xff]  ;;  %v840_v24 = vld [vmem:[#allocation5 + $0xb8] sm:$0xff]  ;;  %v843_v25 = vld [vmem:[#allocation5 + $0xc8] sm:$0xff] }
  0x16   :  { %604 = vmatpush.msra.mxu3 %v112_v11  ;;  %357 = vmatpush.msra.mxu2 %v816_v12  ;;  %v97_v26 = vld [vmem:[#allocation5 + $0x90] sm:$0xff]  ;;  %v846_v27 = vld [vmem:[#allocation5 + $0xa0] sm:$0xff]  ;;  %v94_v29 = vld [vmem:[#allocation5 + $0x78] sm:$0xff] }
  0x17   :  { %243 = vmatpush.msra.mxu1 %v819_v13  ;;  %131 = vmatpush.msra.mxu0 %v112_v11  ;;  %v849_v28 = vld [vmem:[#allocation5 + $0xb0] sm:$0xff]  ;;  %v852_v30 = vld [vmem:[#allocation5 + $0x88] sm:$0xff]  ;;  %v855_v31 = vld [vmem:[#allocation5 + $0x98] sm:$0xff] }
  0x18   :  { %605 = vmatpush.msra.mxu3 %v109_v14  ;;  %358 = vmatpush.msra.mxu2 %v822_v15  ;;  %v91_v32 = vld [vmem:[#allocation5 + $0x60] sm:$0xff]  ;;  %v858_v33 = vld [vmem:[#allocation5 + $0x70] sm:$0xff]  ;;  %v88_v35 = vld [vmem:[#allocation5 + $0x48] sm:$0xff] }
  0x19   :  { %244 = vmatpush.msra.mxu1 %v825_v16  ;;  %132 = vmatpush.msra.mxu0 %v109_v14  ;;  %v861_v34 = vld [vmem:[#allocation5 + $0x80] sm:$0xff]  ;;  %v864_v36 = vld [vmem:[#allocation5 + $0x58] sm:$0xff]  ;;  %v92_v37 = vld [vmem:[#allocation5 + $0x68] sm:$0xff] }
  0x1a   :  { %606 = vmatpush.msra.mxu3 %v106_v17  ;;  %359 = vmatpush.msra.mxu2 %v828_v18  ;;  %v85_v38 = vld [vmem:[#allocation5 + $0x30] sm:$0xff]  ;;  %v868_v39 = vld [vmem:[#allocation5 + $0x40] sm:$0xff]  ;;  %v82_v41 = vld [vmem:[#allocation5 + $0x18] sm:$0xff] }
  0x1b   :  { %245 = vmatpush.msra.mxu1 %v831_v19  ;;  %133 = vmatpush.msra.mxu0 %v106_v17  ;;  %v89_v40 = vld [vmem:[#allocation5 + $0x50] sm:$0xff]  ;;  %v871_v42 = vld [vmem:[#allocation5 + $0x28] sm:$0xff]  ;;  %v86_v43 = vld [vmem:[#allocation5 + $0x38] sm:$0xff] }
  0x1c   :  { %607 = vmatpush.msra.mxu3 %v103_v20  ;;  %360 = vmatpush.msra.mxu2 %v834_v21  ;;  %v79_v44 = vld [vmem:[#allocation5] sm:$0xff]  ;;  %v874_v45 = vld [vmem:[#allocation5 + $0x10] sm:$0xff]  ;;  %v80_v49 = vld [vmem:[#allocation5 + $0x8] sm:$0xff] }
  0x1d   :  { %246 = vmatpush.msra.mxu1 %v837_v22  ;;  %134 = vmatpush.msra.mxu0 %v103_v20  ;;  %v877_v46 = vld [vmem:[#allocation2 + $0xc0] sm:$0xff]  ;;  %v883_v50 = vld [vmem:[#allocation2 + $0xc8] sm:$0xff]  ;;  %v890_v52 = vld [vmem:[#allocation2 + $0xd0] sm:$0xff] }
  0x1e   :  { %608 = vmatpush.msra.mxu3 %v100_v23  ;;  %361 = vmatpush.msra.mxu2 %v840_v24  ;;  %v47_v47 = vld [vmem:[#allocation2] sm:$0xff]  ;;  %v48_v51 = vld [vmem:[#allocation2 + $0x8] sm:$0xff]  ;;  %v49_v53 = vld [vmem:[#allocation2 + $0x10] sm:$0xff] }
  0x1f   :  { %247 = vmatpush.msra.mxu1 %v843_v25  ;;  %135 = vmatpush.msra.mxu0 %v100_v23  ;;  %v83_v48 = vld [vmem:[#allocation5 + $0x20] sm:$0xff]  ;;  %v897_v54 = vld [vmem:[#allocation2 + $0xd8] sm:$0xff]  ;;  %v906_v58 = vld [vmem:[#allocation2 + $0xe8] sm:$0xff] }
  0x20   :  { %609 = vmatpush.msra.mxu3 %v97_v26  ;;  %362 = vmatpush.msra.mxu2 %v846_v27  ;;  %v50_v55 = vld [vmem:[#allocation2 + $0x18] sm:$0xff]  ;;  %v901_v56 = vld [vmem:[#allocation2 + $0xe0] sm:$0xff]  ;;  %v52_v59 = vld [vmem:[#allocation2 + $0x28] sm:$0xff] }
  0x21   :  { %248 = vmatpush.msra.mxu1 %v849_v28  ;;  %136 = vmatpush.msra.mxu0 %v97_v26  ;;  %v51_v57 = vld [vmem:[#allocation2 + $0x20] sm:$0xff]  ;;  %v913_v60 = vld [vmem:[#allocation2 + $0xf0] sm:$0xff]  ;;  %v920_v62 = vld [vmem:[#allocation2 + $0xf8] sm:$0xff] }
  0x22   :  { %610 = vmatpush.msra.mxu3 %v94_v29  ;;  %363 = vmatpush.msra.mxu2 %v852_v30  ;;  %v53_v61 = vld [vmem:[#allocation2 + $0x30] sm:$0xff]  ;;  %v54_v63 = vld [vmem:[#allocation2 + $0x38] sm:$0xff]  ;;  %v55_v0 = vld [vmem:[#allocation2 + $0x40] sm:$0xff] }
  0x23   :  { %249 = vmatpush.msra.mxu1 %v855_v31  ;;  %137 = vmatpush.msra.mxu0 %v94_v29  ;;  %v57_v2 = vld [vmem:[#allocation2 + $0x50] sm:$0xff]  ;;  %v59_v4 = vld [vmem:[#allocation2 + $0x60] sm:$0xff]  ;;  %v64_v14 = vld [vmem:[#allocation2 + $0x88] sm:$0xff] }
  0x24   :  { %611 = vmatpush.msra.mxu3 %v91_v32  ;;  %364 = vmatpush.msra.mxu2 %v858_v33  ;;  %v63_v8 = vld [vmem:[#allocation2 + $0x80] sm:$0xff]  ;;  %v65_v20 = vld [vmem:[#allocation2 + $0x90] sm:$0xff]  ;;  %v66_v26 = vld [vmem:[#allocation2 + $0x98] sm:$0xff] }
  0x25   :  { %250 = vmatpush.msra.mxu1 %v861_v34  ;;  %138 = vmatpush.msra.mxu0 %v91_v32  ;;  %v67_v32 = vld [vmem:[#allocation2 + $0xa0] sm:$0xff] }
  0x26   :  { %612 = vmatpush.msra.mxu3 %v88_v35  ;;  %365 = vmatpush.msra.mxu2 %v864_v36 }
  0x27   :  { %251 = vmatpush.msra.mxu1 %v92_v37  ;;  %139 = vmatpush.msra.mxu0 %v88_v35 }
  0x28   :  { %613 = vmatpush.msra.mxu3 %v85_v38  ;;  %366 = vmatpush.msra.mxu2 %v868_v39 }
  0x29   :  { %252 = vmatpush.msra.mxu1 %v89_v40  ;;  %140 = vmatpush.msra.mxu0 %v85_v38  ;;  %v68_v38 = vld [vmem:[#allocation2 + $0xa8] sm:$0xff] }
  0x2a   :  { %614 = vmatpush.msra.mxu3 %v82_v41  ;;  %367 = vmatpush.msra.mxu2 %v871_v42 }
  0x2b   :  { %253 = vmatpush.msra.mxu1 %v86_v43  ;;  %141 = vmatpush.msra.mxu0 %v82_v41 }
  0x2c   :  { %615 = vmatpush.msra.mxu3 %v79_v44  ;;  %368 = vmatpush.msra.mxu2 %v874_v45 }
  0x2d   :  { %215 = vmatmul.f32.vlgmr.msra.gmra.mxu3 %v877_v46  ;;  %369 = vmatmul.f32.vlgmr.msra.gmra.mxu2 %v47_v47 }
  0x2e   :  { %616 = vmatpush.msrb.mxu3 %v804_v6  ;;  %254 = vmatpush.msra.mxu1 %v83_v48  ;;  %v61_v6 = vld [vmem:[#allocation2 + $0x70] sm:$0xff] }
  0x2f   :  { %142 = vmatpush.msra.mxu0 %v79_v44  ;;  %v69_v44 = vld [vmem:[#allocation2 + $0xb0] sm:$0xff] }
  0x30   :  { %617 = vmatpush.msrb.mxu3 %v807_v7  ;;  %255 = vmatpush.msra.mxu1 %v80_v49  ;;  %v62_v7 = vld [vmem:[#allocation2 + $0x78] sm:$0xff] }
  0x31   :  { %256 = vmatmul.f32.vlgmr.msra.gmra.mxu1 %v47_v47  ;;  %143 = vmatmul.f32.vlgmr.msra.gmra.mxu0 %v47_v47 }
  0x32   :  { %618 = vmatpush.msrb.mxu3 %v813_v10 }
  0x34   :  { %619 = vmatpush.msrb.mxu3 %v819_v13 }
  0x35   :  { %218 = vmatmul.f32.gmra.mxu3 %v883_v50  ;;  %372 = vmatmul.f32.gmra.mxu2 %v48_v51 }
  0x36   :  { %620 = vmatpush.msrb.mxu3 %v825_v16 }
  0x38   :  { %621 = vmatpush.msrb.mxu3 %v831_v19 }
  0x39   :  { %259 = vmatmul.f32.gmra.mxu1 %v48_v51  ;;  %146 = vmatmul.f32.gmra.mxu0 %v48_v51 }
  0x3a   :  { %622 = vmatpush.msrb.mxu3 %v837_v22 }
  0x3c   :  { %623 = vmatpush.msrb.mxu3 %v843_v25 }
  0x3d   :  { %221 = vmatmul.f32.gmra.mxu3 %v890_v52  ;;  %375 = vmatmul.f32.gmra.mxu2 %v49_v53 }
  0x3e   :  { %624 = vmatpush.msrb.mxu3 %v849_v28 }
  0x40   :  { %625 = vmatpush.msrb.mxu3 %v855_v31 }
  0x41   :  { %262 = vmatmul.f32.gmra.mxu1 %v49_v53  ;;  %149 = vmatmul.f32.gmra.mxu0 %v49_v53 }
  0x42   :  { %626 = vmatpush.msrb.mxu3 %v861_v34 }
  0x44   :  { %627 = vmatpush.msrb.mxu3 %v92_v37 }
  0x45   :  { %224 = vmatmul.f32.gmra.mxu3 %v897_v54  ;;  %378 = vmatmul.f32.gmra.mxu2 %v50_v55 }
  0x46   :  { %628 = vmatpush.msrb.mxu3 %v89_v40 }
  0x48   :  { %629 = vmatpush.msrb.mxu3 %v86_v43 }
  0x49   :  { %265 = vmatmul.f32.gmra.mxu1 %v50_v55  ;;  %152 = vmatmul.f32.gmra.mxu0 %v50_v55 }
  0x4a   :  { %630 = vmatpush.msrb.mxu3 %v83_v48 }
  0x4c   :  { %631 = vmatpush.msrb.mxu3 %v80_v49 }
  0x4d   :  { %227 = vmatmul.f32.gmra.mxu3 %v901_v56  ;;  %381 = vmatmul.f32.gmra.mxu2 %v51_v57 }
  0x4e   :  { %632 = vmatpush.msra.mxu3 %v797_v1  ;;  %v56_v1 = vld [vmem:[#allocation2 + $0x48] sm:$0xff] }
  0x50   :  { %633 = vmatpush.msra.mxu3 %v800_v3  ;;  %v58_v3 = vld [vmem:[#allocation2 + $0x58] sm:$0xff] }
  0x51   :  { %268 = vmatmul.f32.gmra.mxu1 %v51_v57  ;;  %155 = vmatmul.f32.gmra.mxu0 %v51_v57 }
  0x52   :  { %634 = vmatpush.msra.mxu3 %v802_v5  ;;  %v60_v5 = vld [vmem:[#allocation2 + $0x68] sm:$0xff] }
  0x54   :  { %635 = vmatpush.msra.mxu3 %v810_v9 }
  0x55   :  { %230 = vmatmul.f32.gmra.mxu3 %v906_v58  ;;  %384 = vmatmul.f32.gmra.mxu2 %v52_v59 }
  0x56   :  { %636 = vmatpush.msra.mxu3 %v816_v12 }
  0x58   :  { %637 = vmatpush.msra.mxu3 %v822_v15 }
  0x59   :  { %271 = vmatmul.f32.gmra.mxu1 %v52_v59  ;;  %158 = vmatmul.f32.gmra.mxu0 %v52_v59 }
  0x5a   :  { %638 = vmatpush.msra.mxu3 %v828_v18 }
  0x5c   :  { %639 = vmatpush.msra.mxu3 %v834_v21 }
  0x5d   :  { %233 = vmatmul.f32.gmra.mxu3 %v913_v60  ;;  %387 = vmatmul.f32.gmra.mxu2 %v53_v61 }
  0x5e   :  { %640 = vmatpush.msra.mxu3 %v840_v24 }
  0x60   :  { %641 = vmatpush.msra.mxu3 %v846_v27 }
  0x61   :  { %274 = vmatmul.f32.gmra.mxu1 %v53_v61  ;;  %161 = vmatmul.f32.gmra.mxu0 %v53_v61 }
  0x62   :  { %642 = vmatpush.msra.mxu3 %v852_v30 }
  0x64   :  { %643 = vmatpush.msra.mxu3 %v858_v33 }
  0x65   :  { %236 = vmatmul.f32.gmra.mxu3 %v920_v62  ;;  %390 = vmatmul.f32.gmra.mxu2 %v54_v63 }
  0x66   :  { %644 = vmatpush.msra.mxu3 %v864_v36 }
  0x68   :  { %645 = vmatpush.msra.mxu3 %v868_v39 }
  0x69   :  { %277 = vmatmul.f32.gmra.mxu1 %v54_v63  ;;  %164 = vmatmul.f32.gmra.mxu0 %v54_v63 }
  0x6a   :  { %646 = vmatpush.msra.mxu3 %v871_v42 }
  0x6c   :  { %647 = vmatpush.msra.mxu3 %v874_v45 }
  0x6d   :  { %328 = vmatmul.f32.vlgmr.msrb.gmra.mxu3 %v877_v46  ;;  %393 = vmatmul.f32.gmra.mxu2 %v55_v0 }
  0x71   :  { %280 = vmatmul.f32.gmra.mxu1 %v55_v0  ;;  %167 = vmatmul.f32.gmra.mxu0 %v55_v0 }
  0x75   :  { %331 = vmatmul.f32.gmra.mxu3 %v883_v50  ;;  %396 = vmatmul.f32.gmra.mxu2 %v56_v1 }
  0x79   :  { %283 = vmatmul.f32.gmra.mxu1 %v56_v1  ;;  %170 = vmatmul.f32.gmra.mxu0 %v56_v1 }
  0x7d   :  { %334 = vmatmul.f32.gmra.mxu3 %v890_v52  ;;  %399 = vmatmul.f32.gmra.mxu2 %v57_v2 }
  0x81   :  { %286 = vmatmul.f32.gmra.mxu1 %v57_v2  ;;  %173 = vmatmul.f32.gmra.mxu0 %v57_v2 }
  0x85   :  { %337 = vmatmul.f32.gmra.mxu3 %v897_v54  ;;  %402 = vmatmul.f32.gmra.mxu2 %v58_v3 }
  0x89   :  { %289 = vmatmul.f32.gmra.mxu1 %v58_v3  ;;  %176 = vmatmul.f32.gmra.mxu0 %v58_v3 }
  0x8d   :  { %340 = vmatmul.f32.gmra.mxu3 %v901_v56  ;;  %405 = vmatmul.f32.gmra.mxu2 %v59_v4 }
  0x91   :  { %292 = vmatmul.f32.gmra.mxu1 %v59_v4  ;;  %179 = vmatmul.f32.gmra.mxu0 %v59_v4 }
  0x95   :  { %343 = vmatmul.f32.gmra.mxu3 %v906_v58  ;;  %408 = vmatmul.f32.gmra.mxu2 %v60_v5 }
  0x99   :  { %295 = vmatmul.f32.gmra.mxu1 %v60_v5  ;;  %182 = vmatmul.f32.gmra.mxu0 %v60_v5 }
  0x9d   :  { %346 = vmatmul.f32.gmra.mxu3 %v913_v60  ;;  %411 = vmatmul.f32.gmra.mxu2 %v61_v6 }
  0xa1   :  { %298 = vmatmul.f32.gmra.mxu1 %v61_v6  ;;  %185 = vmatmul.f32.gmra.mxu0 %v61_v6 }
  0xa5   :  { %349 = vmatmul.f32.gmra.mxu3 %v920_v62  ;;  %414 = vmatmul.f32.gmra.mxu2 %v62_v7 }
  0xa9   :  { %301 = vmatmul.f32.gmra.mxu1 %v62_v7  ;;  %188 = vmatmul.f32.gmra.mxu0 %v62_v7 }
  0xad   :  { %417 = vmatmul.f32.gmra.mxu2 %v63_v8  ;;  %441 = vmatmul.f32.vlgmr.msra.gmra.mxu3 %v877_v46 }
  0xae   :  { %v257_v9 = vpop.f32.mrf.mxu1  ;;  %v144_v10 = vpop.f32.mrf.mxu0 }
  0xaf   :  { %466 = vst [vmem:[#allocation7] sm:$0xff] %v144_v10 }
  0xb0   :  { %v216_v11 = vpop.f32.mrf.mxu3  ;;  %v370_v12 = vpop.f32.mrf.mxu2 }
  0xb1   :  { %490 = vst [vmem:[#allocation7 + $0xc0] sm:$0xff] %v216_v11  ;;  %v498_v13 = vpack.c.bf16 %v370_v12, %v257_v9  ;;  %304 = vmatmul.f32.gmra.mxu1 %v63_v8  ;;  %191 = vmatmul.f32.gmra.mxu0 %v63_v8 }
  0xb3   :  { %530 = vst [vmem:[#allocation8] sm:$0xff] %v498_v13 }
  0xb5   :  { %420 = vmatmul.f32.gmra.mxu2 %v64_v14  ;;  %444 = vmatmul.f32.gmra.mxu3 %v883_v50  ;;  %v70_v50 = vld [vmem:[#allocation2 + $0xb8] sm:$0xff] }
  0xb6   :  { %v260_v15 = vpop.f32.mrf.mxu1  ;;  %v147_v16 = vpop.f32.mrf.mxu0 }
  0xb7   :  { %467 = vst [vmem:[#allocation7 + $0x8] sm:$0xff] %v147_v16 }
  0xb8   :  { %v219_v17 = vpop.f32.mrf.mxu3  ;;  %v373_v18 = vpop.f32.mrf.mxu2 }
  0xb9   :  { %491 = vst [vmem:[#allocation7 + $0xc8] sm:$0xff] %v219_v17  ;;  %v499_v19 = vpack.c.bf16 %v373_v18, %v260_v15  ;;  %307 = vmatmul.f32.gmra.mxu1 %v64_v14  ;;  %194 = vmatmul.f32.gmra.mxu0 %v64_v14 }
  0xbb   :  { %531 = vst [vmem:[#allocation8 + $0x8] sm:$0xff] %v499_v19 }
  0xbd   :  { %423 = vmatmul.f32.gmra.mxu2 %v65_v20  ;;  %447 = vmatmul.f32.gmra.mxu3 %v890_v52 }
  0xbe   :  { %v263_v21 = vpop.f32.mrf.mxu1  ;;  %v150_v22 = vpop.f32.mrf.mxu0 }
  0xbf   :  { %468 = vst [vmem:[#allocation7 + $0x10] sm:$0xff] %v150_v22 }
  0xc0   :  { %v222_v23 = vpop.f32.mrf.mxu3  ;;  %v376_v24 = vpop.f32.mrf.mxu2 }
  0xc1   :  { %492 = vst [vmem:[#allocation7 + $0xd0] sm:$0xff] %v222_v23  ;;  %v500_v25 = vpack.c.bf16 %v376_v24, %v263_v21  ;;  %310 = vmatmul.f32.gmra.mxu1 %v65_v20  ;;  %197 = vmatmul.f32.gmra.mxu0 %v65_v20 }
  0xc3   :  { %532 = vst [vmem:[#allocation8 + $0x10] sm:$0xff] %v500_v25 }
  0xc5   :  { %426 = vmatmul.f32.gmra.mxu2 %v66_v26  ;;  %450 = vmatmul.f32.gmra.mxu3 %v897_v54 }
  0xc6   :  { %v266_v27 = vpop.f32.mrf.mxu1  ;;  %v153_v28 = vpop.f32.mrf.mxu0 }
  0xc7   :  { %469 = vst [vmem:[#allocation7 + $0x18] sm:$0xff] %v153_v28 }
  0xc8   :  { %v225_v29 = vpop.f32.mrf.mxu3  ;;  %v379_v30 = vpop.f32.mrf.mxu2 }
  0xc9   :  { %493 = vst [vmem:[#allocation7 + $0xd8] sm:$0xff] %v225_v29  ;;  %v501_v31 = vpack.c.bf16 %v379_v30, %v266_v27  ;;  %313 = vmatmul.f32.gmra.mxu1 %v66_v26  ;;  %200 = vmatmul.f32.gmra.mxu0 %v66_v26 }
  0xcb   :  { %533 = vst [vmem:[#allocation8 + $0x18] sm:$0xff] %v501_v31 }
  0xcd   :  { %429 = vmatmul.f32.gmra.mxu2 %v67_v32  ;;  %453 = vmatmul.f32.gmra.mxu3 %v901_v56 }
  0xce   :  { %v269_v33 = vpop.f32.mrf.mxu1  ;;  %v156_v34 = vpop.f32.mrf.mxu0 }
  0xcf   :  { %470 = vst [vmem:[#allocation7 + $0x20] sm:$0xff] %v156_v34 }
  0xd0   :  { %v228_v35 = vpop.f32.mrf.mxu3  ;;  %v382_v36 = vpop.f32.mrf.mxu2 }
  0xd1   :  { %494 = vst [vmem:[#allocation7 + $0xe0] sm:$0xff] %v228_v35  ;;  %v502_v37 = vpack.c.bf16 %v382_v36, %v269_v33  ;;  %316 = vmatmul.f32.gmra.mxu1 %v67_v32  ;;  %203 = vmatmul.f32.gmra.mxu0 %v67_v32 }
  0xd3   :  { %534 = vst [vmem:[#allocation8 + $0x20] sm:$0xff] %v502_v37 }
  0xd5   :  { %432 = vmatmul.f32.gmra.mxu2 %v68_v38  ;;  %456 = vmatmul.f32.gmra.mxu3 %v906_v58 }
  0xd6   :  { %v272_v39 = vpop.f32.mrf.mxu1  ;;  %v159_v40 = vpop.f32.mrf.mxu0 }
  0xd7   :  { %471 = vst [vmem:[#allocation7 + $0x28] sm:$0xff] %v159_v40 }
  0xd8   :  { %v231_v41 = vpop.f32.mrf.mxu3  ;;  %v385_v42 = vpop.f32.mrf.mxu2 }
  0xd9   :  { %495 = vst [vmem:[#allocation7 + $0xe8] sm:$0xff] %v231_v41  ;;  %v503_v43 = vpack.c.bf16 %v385_v42, %v272_v39  ;;  %319 = vmatmul.f32.gmra.mxu1 %v68_v38  ;;  %206 = vmatmul.f32.gmra.mxu0 %v68_v38 }
  0xdb   :  { %535 = vst [vmem:[#allocation8 + $0x28] sm:$0xff] %v503_v43 }
  0xdd   :  { %435 = vmatmul.f32.gmra.mxu2 %v69_v44  ;;  %459 = vmatmul.f32.gmra.mxu3 %v913_v60 }
  0xde   :  { %v275_v45 = vpop.f32.mrf.mxu1  ;;  %v162_v46 = vpop.f32.mrf.mxu0 }
  0xdf   :  { %472 = vst [vmem:[#allocation7 + $0x30] sm:$0xff] %v162_v46 }
  0xe0   :  { %v234_v47 = vpop.f32.mrf.mxu3  ;;  %v388_v48 = vpop.f32.mrf.mxu2 }
  0xe1   :  { %496 = vst [vmem:[#allocation7 + $0xf0] sm:$0xff] %v234_v47  ;;  %v504_v49 = vpack.c.bf16 %v388_v48, %v275_v45  ;;  %322 = vmatmul.f32.gmra.mxu1 %v69_v44  ;;  %209 = vmatmul.f32.gmra.mxu0 %v69_v44 }
  0xe3   :  { %536 = vst [vmem:[#allocation8 + $0x30] sm:$0xff] %v504_v49 }
  0xe5   :  { %438 = vmatmul.f32.gmra.mxu2 %v70_v50  ;;  %462 = vmatmul.f32.gmra.mxu3 %v920_v62 }
  0xe6   :  { %v278_v51 = vpop.f32.mrf.mxu1  ;;  %v165_v52 = vpop.f32.mrf.mxu0 }
  0xe7   :  { %473 = vst [vmem:[#allocation7 + $0x38] sm:$0xff] %v165_v52 }
  0xe8   :  { %v237_v53 = vpop.f32.mrf.mxu3  ;;  %v391_v54 = vpop.f32.mrf.mxu2 }
  0xe9   :  { %497 = vst [vmem:[#allocation7 + $0xf8] sm:$0xff] %v237_v53  ;;  %v505_v55 = vpack.c.bf16 %v391_v54, %v278_v51  ;;  %325 = vmatmul.f32.gmra.mxu1 %v70_v50  ;;  %212 = vmatmul.f32.gmra.mxu0 %v70_v50 }
  0xeb   :  { %537 = vst [vmem:[#allocation8 + $0x38] sm:$0xff] %v505_v55 }
  0xee   :  { %v281_v56 = vpop.f32.mrf.mxu1  ;;  %v168_v57 = vpop.f32.mrf.mxu0 }
  0xef   :  { %474 = vst [vmem:[#allocation7 + $0x40] sm:$0xff] %v168_v57 }
  0xf0   :  { %v329_v58 = vpop.f32.mrf.mxu3  ;;  %v394_v59 = vpop.f32.mrf.mxu2 }
  0xf1   :  { %v506_v60 = vpack.c.bf16 %v394_v59, %v281_v56 }
  0xf3   :  { %538 = vst [vmem:[#allocation8 + $0x40] sm:$0xff] %v506_v60 }
  0xf6   :  { %v284_v61 = vpop.f32.mrf.mxu1  ;;  %v171_v63 = vpop.f32.mrf.mxu0 }
  0xf7   :  { %475 = vst [vmem:[#allocation7 + $0x48] sm:$0xff] %v171_v63 }
  0xf8   :  { %v945_v62 = vpop.f32.mrf.mxu3  ;;  %v397_v0 = vpop.f32.mrf.mxu2 }
  0xf9   :  { %v507_v1 = vpack.c.bf16 %v397_v0, %v284_v61 }
  0xfb   :  { %539 = vst [vmem:[#allocation8 + $0x48] sm:$0xff] %v507_v1 }
  0xfe   :  { %v287_v2 = vpop.f32.mrf.mxu1  ;;  %v174_v3 = vpop.f32.mrf.mxu0 }
  0xff   :  { %476 = vst [vmem:[#allocation7 + $0x50] sm:$0xff] %v174_v3 }
 0x100   :  { %v947_v4 = vpop.f32.mrf.mxu3  ;;  %v400_v5 = vpop.f32.mrf.mxu2 }
 0x101   :  { %v508_v6 = vpack.c.bf16 %v400_v5, %v287_v2 }
 0x103   :  { %540 = vst [vmem:[#allocation8 + $0x50] sm:$0xff] %v508_v6 }
 0x106   :  { %v290_v7 = vpop.f32.mrf.mxu1  ;;  %v177_v8 = vpop.f32.mrf.mxu0 }
 0x107   :  { %477 = vst [vmem:[#allocation7 + $0x58] sm:$0xff] %v177_v8 }
 0x108   :  { %v949_v9 = vpop.f32.mrf.mxu3  ;;  %v403_v10 = vpop.f32.mrf.mxu2 }
 0x109   :  { %v509_v11 = vpack.c.bf16 %v403_v10, %v290_v7 }
 0x10b   :  { %541 = vst [vmem:[#allocation8 + $0x58] sm:$0xff] %v509_v11 }
 0x10e   :  { %v293_v12 = vpop.f32.mrf.mxu1  ;;  %v180_v13 = vpop.f32.mrf.mxu0 }
 0x10f   :  { %478 = vst [vmem:[#allocation7 + $0x60] sm:$0xff] %v180_v13 }
 0x110   :  { %v951_v14 = vpop.f32.mrf.mxu3  ;;  %v406_v15 = vpop.f32.mrf.mxu2 }
 0x111   :  { %v510_v16 = vpack.c.bf16 %v406_v15, %v293_v12 }
 0x113   :  { %542 = vst [vmem:[#allocation8 + $0x60] sm:$0xff] %v510_v16 }
 0x116   :  { %v296_v17 = vpop.f32.mrf.mxu1  ;;  %v183_v18 = vpop.f32.mrf.mxu0 }
 0x117   :  { %479 = vst [vmem:[#allocation7 + $0x68] sm:$0xff] %v183_v18 }
 0x118   :  { %v953_v19 = vpop.f32.mrf.mxu3  ;;  %v409_v20 = vpop.f32.mrf.mxu2 }
 0x119   :  { %v511_v21 = vpack.c.bf16 %v409_v20, %v296_v17 }
 0x11b   :  { %543 = vst [vmem:[#allocation8 + $0x68] sm:$0xff] %v511_v21 }
 0x11e   :  { %v299_v22 = vpop.f32.mrf.mxu1  ;;  %v186_v23 = vpop.f32.mrf.mxu0 }
 0x11f   :  { %480 = vst [vmem:[#allocation7 + $0x70] sm:$0xff] %v186_v23 }
 0x120   :  { %v955_v24 = vpop.f32.mrf.mxu3  ;;  %v412_v25 = vpop.f32.mrf.mxu2 }
 0x121   :  { %v512_v26 = vpack.c.bf16 %v412_v25, %v299_v22 }
 0x123   :  { %544 = vst [vmem:[#allocation8 + $0x70] sm:$0xff] %v512_v26 }
 0x126   :  { %v302_v27 = vpop.f32.mrf.mxu1  ;;  %v189_v28 = vpop.f32.mrf.mxu0 }
 0x127   :  { %481 = vst [vmem:[#allocation7 + $0x78] sm:$0xff] %v189_v28 }
 0x128   :  { %v957_v29 = vpop.f32.mrf.mxu3  ;;  %v415_v30 = vpop.f32.mrf.mxu2 }
 0x129   :  { %v513_v31 = vpack.c.bf16 %v415_v30, %v302_v27 }
 0x12b   :  { %545 = vst [vmem:[#allocation8 + $0x78] sm:$0xff] %v513_v31 }
 0x12e   :  { %v305_v32 = vpop.f32.mrf.mxu1  ;;  %v192_v33 = vpop.f32.mrf.mxu0 }
 0x12f   :  { %482 = vst [vmem:[#allocation7 + $0x80] sm:$0xff] %v192_v33 }
 0x130   :  { %v418_v34 = vpop.f32.mrf.mxu2  ;;  %v442_v35 = vpop.f32.mrf.mxu3 }
 0x131   :  { %v514_v36 = vpack.c.bf16 %v418_v34, %v305_v32  ;;  %v522_v37 = vpack.c.bf16 %v442_v35, %v329_v58 }
 0x133   :  { %546 = vst [vmem:[#allocation8 + $0x80] sm:$0xff] %v514_v36 }
 0x134   :  { %554 = vst [vmem:[#allocation8 + $0xc0] sm:$0xff] %v522_v37 }
 0x136   :  { %v308_v38 = vpop.f32.mrf.mxu1  ;;  %v195_v39 = vpop.f32.mrf.mxu0 }
 0x137   :  { %483 = vst [vmem:[#allocation7 + $0x88] sm:$0xff] %v195_v39 }
 0x138   :  { %v421_v40 = vpop.f32.mrf.mxu2  ;;  %v445_v41 = vpop.f32.mrf.mxu3 }
 0x139   :  { %v515_v42 = vpack.c.bf16 %v421_v40, %v308_v38  ;;  %v523_v43 = vpack.c.bf16 %v445_v41, %v945_v62 }
 0x13b   :  { %547 = vst [vmem:[#allocation8 + $0x88] sm:$0xff] %v515_v42 }
 0x13c   :  { %555 = vst [vmem:[#allocation8 + $0xc8] sm:$0xff] %v523_v43 }
 0x13e   :  { %v311_v44 = vpop.f32.mrf.mxu1  ;;  %v198_v45 = vpop.f32.mrf.mxu0 }
 0x13f   :  { %484 = vst [vmem:[#allocation7 + $0x90] sm:$0xff] %v198_v45 }
 0x140   :  { %v424_v46 = vpop.f32.mrf.mxu2  ;;  %v448_v47 = vpop.f32.mrf.mxu3 }
 0x141   :  { %v516_v48 = vpack.c.bf16 %v424_v46, %v311_v44  ;;  %v524_v49 = vpack.c.bf16 %v448_v47, %v947_v4 }
 0x143   :  { %548 = vst [vmem:[#allocation8 + $0x90] sm:$0xff] %v516_v48 }
 0x144   :  { %556 = vst [vmem:[#allocation8 + $0xd0] sm:$0xff] %v524_v49 }
 0x146   :  { %v314_v50 = vpop.f32.mrf.mxu1  ;;  %v201_v51 = vpop.f32.mrf.mxu0 }
 0x147   :  { %485 = vst [vmem:[#allocation7 + $0x98] sm:$0xff] %v201_v51 }
 0x148   :  { %v427_v52 = vpop.f32.mrf.mxu2  ;;  %v451_v53 = vpop.f32.mrf.mxu3 }
 0x149   :  { %v517_v54 = vpack.c.bf16 %v427_v52, %v314_v50  ;;  %v525_v55 = vpack.c.bf16 %v451_v53, %v949_v9 }
 0x14b   :  { %549 = vst [vmem:[#allocation8 + $0x98] sm:$0xff] %v517_v54 }
 0x14c   :  { %557 = vst [vmem:[#allocation8 + $0xd8] sm:$0xff] %v525_v55 }
 0x14e   :  { %v317_v56 = vpop.f32.mrf.mxu1  ;;  %v204_v57 = vpop.f32.mrf.mxu0 }
 0x14f   :  { %486 = vst [vmem:[#allocation7 + $0xa0] sm:$0xff] %v204_v57 }
 0x150   :  { %v430_v58 = vpop.f32.mrf.mxu2  ;;  %v454_v59 = vpop.f32.mrf.mxu3 }
 0x151   :  { %v518_v60 = vpack.c.bf16 %v430_v58, %v317_v56  ;;  %v526_v61 = vpack.c.bf16 %v454_v59, %v951_v14 }
 0x153   :  { %550 = vst [vmem:[#allocation8 + $0xa0] sm:$0xff] %v518_v60 }
 0x154   :  { %558 = vst [vmem:[#allocation8 + $0xe0] sm:$0xff] %v526_v61 }
 0x156   :  { %v320_v63 = vpop.f32.mrf.mxu1  ;;  %v207_v62 = vpop.f32.mrf.mxu0 }
 0x157   :  { %487 = vst [vmem:[#allocation7 + $0xa8] sm:$0xff] %v207_v62 }
 0x158   :  { %v433_v0 = vpop.f32.mrf.mxu2  ;;  %v457_v1 = vpop.f32.mrf.mxu3 }
 0x159   :  { %v519_v2 = vpack.c.bf16 %v433_v0, %v320_v63  ;;  %v527_v3 = vpack.c.bf16 %v457_v1, %v953_v19 }
 0x15b   :  { %551 = vst [vmem:[#allocation8 + $0xa8] sm:$0xff] %v519_v2 }
 0x15c   :  { %559 = vst [vmem:[#allocation8 + $0xe8] sm:$0xff] %v527_v3 }
 0x15e   :  { %v323_v4 = vpop.f32.mrf.mxu1  ;;  %v210_v5 = vpop.f32.mrf.mxu0 }
 0x15f   :  { %488 = vst [vmem:[#allocation7 + $0xb0] sm:$0xff] %v210_v5 }
 0x160   :  { %v436_v6 = vpop.f32.mrf.mxu2  ;;  %v460_v7 = vpop.f32.mrf.mxu3 }
 0x161   :  { %v520_v8 = vpack.c.bf16 %v436_v6, %v323_v4  ;;  %v528_v9 = vpack.c.bf16 %v460_v7, %v955_v24 }
 0x163   :  { %552 = vst [vmem:[#allocation8 + $0xb0] sm:$0xff] %v520_v8 }
 0x164   :  { %560 = vst [vmem:[#allocation8 + $0xf0] sm:$0xff] %v528_v9 }
 0x166   :  { %v326_v10 = vpop.f32.mrf.mxu1  ;;  %v213_v11 = vpop.f32.mrf.mxu0 }
 0x167   :  { %489 = vst [vmem:[#allocation7 + $0xb8] sm:$0xff] %v213_v11 }
 0x168   :  { %v439_v12 = vpop.f32.mrf.mxu2  ;;  %v463_v13 = vpop.f32.mrf.mxu3  ;;  %574 = dma.vmem_to_hbm [thread:$0]  %s567_s25, 4096, %s569_s28, [#allocation4], %s761_s20, %s761_s20, %s762_s21  }
 0x169   :  { %v521_v14 = vpack.c.bf16 %v439_v12, %v326_v10  ;;  %v529_v15 = vpack.c.bf16 %v463_v13, %v957_v29 }
 0x16b   :  { %553 = vst [vmem:[#allocation8 + $0xb8] sm:$0xff] %v521_v14 }
 0x16c   :  { %561 = vst [vmem:[#allocation8 + $0xf8] sm:$0xff] %v529_v15 }
 0x16d   :  { %587 = dma.vmem_to_hbm [thread:$0]  %s580_s30, 4096, %s582_s6, [#allocation9], %s761_s20, %s761_s20, %s762_s21  }
 0x16e   :  { %756 = dma.done.wait [#allocation4], 4096  }
 0x16f   :  { %757 = vsyncadd [#allocation4], 4294963200 }
 0x170   :  { %758 = dma.done.wait [#allocation9], 4096  }
 0x171   :  { %759 = vsyncadd [#allocation9], 4294963200 }
 0x172   :  { %596 = vsyncpa [#allocation3], 1 }
 0x173   :  { %597 = vsyncpa [#allocation6], 1 }
 0x174   :  { %598 = vsyncpa [#allocation4], 1 }
 0x175   :  { %599 = vsyncpa [#allocation9], 1 }

</bundles_post_ra>
